<compile_context>
chip_gen: v7x
topology: tpu7x:2x2x1
jax: 0.10.0
libtpu: 0.0.40
codegen_flags: <defaults>
</compile_context>

<pallas_src>
import functools

import jax
import jax.numpy as jnp
from jax.experimental import pallas as pl
from jax.experimental.pallas import tpu as pltpu


# ------------------------------- utilities ---------------------------------


def _round_up(x, m):
    return ((x + m - 1) // m) * m


def _pad2d(a, rows, cols):
    r, c = a.shape
    if rows == r and cols == c:
        return a
    return jnp.pad(a, ((0, rows - r), (0, cols - c)))


def _plan_dim(dim, cap, align):
    """Pick (tile, padded_dim). tile is the full dim (always legal) or an
    `align`-multiple <= cap; padded_dim is a multiple of tile, padded as
    little as possible."""
    if dim <= cap:
        return dim, dim
    cap = max(align, (cap // align) * align)
    padded = _round_up(dim, align)
    for t in range(cap, align - 1, -align):      # prefer biggest aligned tile
        if padded % t == 0:
            return t, padded
    return cap, _round_up(dim, cap)


def _default_matmul_tiles():
    """Generation-aware output-tile caps (ridge-point reasoning from review)."""
    try:
        kind = jax.devices()[0].device_kind.lower()
    except Exception:  # pragma: no cover - defensive
        kind = ""
    if "v6" in kind:
        return 1024, 1024, 512      # v6e: ~650 flop/B ridge, 128 MiB VMEM
    return 512, 512, 512            # v5e / v7x (64 MiB VMEM) / default


def _vmem_limit(est_bytes):
    # Stay within v7x's 64 MiB physical VMEM while giving headroom over the
    # 16/32 MiB default scoped limits.
    return int(min(64 * 2**20, max(32 * 2**20, 2 * est_bytes)))


# --------------------------- tiled linear kernel ----------------------------


def _matmul_kernel(x_ref, w_ref, b_ref, o_ref, acc_ref, *, activation):
    k = pl.program_id(2)

    @pl.when(k == 0)
    def _():
        acc_ref[...] = jnp.zeros_like(acc_ref)

    acc_ref[...] += jnp.dot(x_ref[...], w_ref[...],
                            preferred_element_type=jnp.float32)

    @pl.when(k == pl.num_programs(2) - 1)
    def _():
        y = acc_ref[...] + b_ref[...]
        if activation == "gelu":
            # TODO(synk): HF bert uses erf-GELU; tanh approx differs by <1e-3.
            c = 0.7978845608028654  # sqrt(2/pi)
            y = 0.5 * y * (1.0 + jnp.tanh(c * (y + 0.044715 * y * y * y)))
        o_ref[...] = y.astype(o_ref.dtype)


def pallas_linear(x, w, b, activation=None, out_dtype=jnp.bfloat16,
                  tm=None, tn=None, tk=None):
    """y = act(x @ w + b); x:(M,K) bf16, w:(K,N) bf16, b:(N,) f32."""
    dm, dn, dk = _default_matmul_tiles()
    tm = dm if tm is None else tm
    tn = dn if tn is None else tn
    tk = dk if tk is None else tk

    M, K = x.shape
    K2, N = w.shape
    assert K == K2
    tm, Mp = _plan_dim(M, tm, 8)
    tn, Np = _plan_dim(N, tn, 128)
    tk, Kp = _plan_dim(K, tk, 128)

    xp = _pad2d(x, Mp, Kp)
    wp = _pad2d(w, Kp, Np)
    bp = jnp.pad(b.astype(jnp.float32), (0, Np - N)).reshape(1, Np)

    grid = (Mp // tm, Np // tn, Kp // tk)
    est = 4 * tm * tn + 2 * 2 * (tm * tk + tk * tn + tm * tn) + (1 << 20)

    out = pl.pallas_call(
        functools.partial(_matmul_kernel, activation=activation),
        out_shape=jax.ShapeDtypeStruct((Mp, Np), out_dtype),
        grid=grid,
        in_specs=[
            pl.BlockSpec((tm, tk), lambda i, j, k: (i, k)),
            pl.BlockSpec((tk, tn), lambda i, j, k: (k, j)),
            pl.BlockSpec((1, tn), lambda i, j, k: (0, j)),
        ],
        out_specs=pl.BlockSpec((tm, tn), lambda i, j, k: (i, j)),
        scratch_shapes=[pltpu.VMEM((tm, tn), jnp.float32)],
        compiler_params=pltpu.CompilerParams(
            dimension_semantics=("parallel", "parallel", "arbitrary"),
            vmem_limit_bytes=_vmem_limit(est)),
    )(xp, wp, bp)
    if Mp != M or Np != N:
        out = out[:M, :N]
    return out


# -------------- matmul with fused (bias + residual + LayerNorm) -------------


def _matmul_resln_kernel(x_ref, w_ref, b_ref, r_ref, g_ref, be_ref, o_ref,
                         acc_ref, *, eps):
    k = pl.program_id(1)

    @pl.when(k == 0)
    def _():
        acc_ref[...] = jnp.zeros_like(acc_ref)

    acc_ref[...] += jnp.dot(x_ref[...], w_ref[...],
                            preferred_element_type=jnp.float32)

    @pl.when(k == pl.num_programs(1) - 1)
    def _():
        y = acc_ref[...] + b_ref[...] + r_ref[...].astype(jnp.float32)
        mean = jnp.mean(y, axis=-1, keepdims=True)
        yc = y - mean
        var = jnp.mean(yc * yc, axis=-1, keepdims=True)
        inv = jax.lax.rsqrt(var + eps)
        o_ref[...] = (yc * inv * g_ref[...] + be_ref[...]).astype(o_ref.dtype)


def pallas_linear_resln(x, w, b, residual, gamma, beta, eps=1e-12,
                        out_dtype=jnp.bfloat16, tm=None, tk=None):
    """LayerNorm(x @ w + b + residual). N (=hidden) is kept in one block so
    the LN reduction is complete inside the matmul epilogue (no standalone
    LayerNorm HBM round-trip)."""
    dm, _, dk = _default_matmul_tiles()
    tm = dm if tm is None else tm
    tk = dk if tk is None else tk

    M, K = x.shape
    K2, N = w.shape
    assert K == K2 and residual.shape == (M, N)
    tm, Mp = _plan_dim(M, tm, 8)
    tk, Kp = _plan_dim(K, tk, 128)

    xp = _pad2d(x, Mp, Kp)
    wp = _pad2d(w, Kp, N)
    rp = _pad2d(residual, Mp, N)
    bp = b.astype(jnp.float32).reshape(1, N)
    gp = gamma.astype(jnp.float32).reshape(1, N)
    bep = beta.astype(jnp.float32).reshape(1, N)

    grid = (Mp // tm, Kp // tk)
    est = 4 * tm * N + 2 * 2 * (tm * tk + tk * N + 2 * tm * N) + (1 << 20)

    out = pl.pallas_call(
        functools.partial(_matmul_resln_kernel, eps=eps),
        out_shape=jax.ShapeDtypeStruct((Mp, N), out_dtype),
        grid=grid,
        in_specs=[
            pl.BlockSpec((tm, tk), lambda i, k: (i, k)),
            pl.BlockSpec((tk, N), lambda i, k: (k, 0)),
            pl.BlockSpec((1, N), lambda i, k: (0, 0)),
            pl.BlockSpec((tm, N), lambda i, k: (i, 0)),   # residual, per row tile
            pl.BlockSpec((1, N), lambda i, k: (0, 0)),
            pl.BlockSpec((1, N), lambda i, k: (0, 0)),
        ],
        out_specs=pl.BlockSpec((tm, N), lambda i, k: (i, 0)),
        scratch_shapes=[pltpu.VMEM((tm, N), jnp.float32)],
        compiler_params=pltpu.CompilerParams(
            dimension_semantics=("parallel", "arbitrary"),
            vmem_limit_bytes=_vmem_limit(est)),
    )(xp, wp, bp, rp, gp, bep)
    if Mp != M:
        out = out[:M]
    return out


# --------------------------- standalone LayerNorm ---------------------------


def _layernorm_kernel(x_ref, g_ref, b_ref, o_ref, *, eps):
    x = x_ref[...].astype(jnp.float32)
    mean = jnp.mean(x, axis=-1, keepdims=True)
    xc = x - mean
    var = jnp.mean(xc * xc, axis=-1, keepdims=True)
    o_ref[...] = (xc * jax.lax.rsqrt(var + eps) * g_ref[...]
                  + b_ref[...]).astype(o_ref.dtype)


def pallas_layernorm(x, gamma, beta, eps=1e-12, out_dtype=jnp.bfloat16,
                     tm=1024):
    """Row-tiled LayerNorm (used only for the embedding LN)."""
    M, H = x.shape
    tm, Mp = _plan_dim(M, tm, 8)
    xp = _pad2d(x, Mp, H)
    gp = gamma.astype(jnp.float32).reshape(1, H)
    bp = beta.astype(jnp.float32).reshape(1, H)
    row_spec = pl.BlockSpec((tm, H), lambda i: (i, 0))
    vec_spec = pl.BlockSpec((1, H), lambda i: (0, 0))
    out = pl.pallas_call(
        functools.partial(_layernorm_kernel, eps=eps),
        out_shape=jax.ShapeDtypeStruct((Mp, H), out_dtype),
        grid=(Mp // tm,),
        in_specs=[row_spec, vec_spec, vec_spec],
        out_specs=row_spec,
        compiler_params=pltpu.CompilerParams(dimension_semantics=("parallel",)),
    )(xp, gp, bp)
    if Mp != M:
        out = out[:M]
    return out


# ------------------------- multi-head self-attention ------------------------


def _qkv_group(heads, dh):
    """Smallest head-group whose context width is lane-dense (128-multiple);
    fall back to all heads (then the block is the full last dim)."""
    for g in range(1, heads + 1):
        if heads % g == 0 and (g * dh) % 128 == 0:
            return g
    return heads


def _attention_kernel(qkv_ref, o_ref, *, group, dh, scale):
    # qkv_ref block: (1, S, 3*group*dh) -- one head-group of one batch element,
    # columns laid out [Q(group*dh) | K(group*dh) | V(group*dh)] (static,
    # lane-aligned slices; no dynamic lane offsets, no HBM head transposes).
    gdh = group * dh
    ctx = []
    for h in range(group):                       # static unroll (group == 2)
        q = qkv_ref[0, :, h * dh:(h + 1) * dh] * scale          # scale folded
        k = qkv_ref[0, :, gdh + h * dh:gdh + (h + 1) * dh]
        v = qkv_ref[0, :, 2 * gdh + h * dh:2 * gdh + (h + 1) * dh]
        # Contract the last dims directly (no explicit k.T / XLU transpose).
        s = jax.lax.dot_general(q, k, (((1,), (1,)), ((), ())),
                                preferred_element_type=jnp.float32)   # (S, S)
        s = s - jnp.max(s, axis=-1, keepdims=True)
        e = jnp.exp(s)
        p = e * pl.reciprocal(jnp.sum(e, axis=-1, keepdims=True), approx=True)
        ctx.append(jnp.dot(p.astype(v.dtype), v,
                           preferred_element_type=jnp.float32))       # (S, dh)
    out = ctx[0] if group == 1 else jnp.concatenate(ctx, axis=-1)
    o_ref[0] = out.astype(o_ref.dtype)


def pallas_attention(qkv, B, S, heads, dh, out_dtype=jnp.bfloat16):
    # TODO(synk): for long sequences (S >= ~1K, earlier on v7x's 64 MiB VMEM)
    # switch to an online-softmax (flash) formulation with a KV-tile grid axis.
    H = heads * dh
    group = _qkv_group(heads, dh)
    P = heads // group
    gdh = group * dh
    qkv3 = qkv.reshape(B, S, 3 * H)              # pair-major column layout
    scale = 1.0 / (dh ** 0.5)
    est = 2 * 2 * S * 4 * gdh + group * 2 * (S * S * 4 + S * dh * 4) + (1 << 20)
    return pl.pallas_call(
        functools.partial(_attention_kernel, group=group, dh=dh, scale=scale),
        out_shape=jax.ShapeDtypeStruct((B, S, H), out_dtype),
        grid=(B, P),
        in_specs=[pl.BlockSpec((1, S, 3 * gdh), lambda b, p: (b, 0, p))],
        out_specs=pl.BlockSpec((1, S, gdh), lambda b, p: (b, 0, p)),
        compiler_params=pltpu.CompilerParams(
            dimension_semantics=("parallel", "parallel"),
            vmem_limit_bytes=_vmem_limit(est)),
    )(qkv3)


# ------------------------------ model (glue) --------------------------------


def init_params(key, *, vocab, hidden, heads, layers, intermediate,
                max_pos, type_vocab, num_classes):
    ks = iter(jax.random.split(key, 8 + layers * 12))
    n01 = lambda shape: jax.random.normal(next(ks), shape, jnp.float32) * 0.02
    bf = jnp.bfloat16
    dh = hidden // heads
    group = _qkv_group(heads, dh)

    nc_pad = _round_up(num_classes, 128)          # lane-dense classifier N
    fc_w = n01((hidden, num_classes))
    fc_w_pad = jnp.zeros((hidden, nc_pad), jnp.float32).at[:, :num_classes].set(fc_w)

    p = {
        "word_emb": n01((vocab, hidden)),
        "pos_emb": n01((max_pos, hidden)),
        "type_emb": n01((type_vocab, hidden)),
        "emb_ln_g": jnp.ones((hidden,), jnp.float32),
        "emb_ln_b": jnp.zeros((hidden,), jnp.float32),
        "fc_w_pad": fc_w_pad.astype(bf),
        "fc_b_pad": jnp.zeros((nc_pad,), jnp.float32),
        "num_classes": num_classes,
        "layers": [],
    }
    for _ in range(layers):
        wq, wk, wv = (n01((hidden, hidden)) for _ in range(3))
        # Fused QKV weight, columns reordered head-group-major so the attention
        # kernel reads one contiguous, lane-aligned [Q|K|V] band per grid step.
        blocks = []
        for g in range(heads // group):
            sl = slice(g * group * dh, (g + 1) * group * dh)
            blocks += [wq[:, sl], wk[:, sl], wv[:, sl]]
        wqkv = jnp.concatenate(blocks, axis=1)
        lp = {
            "wqkv": wqkv.astype(bf),
            "bqkv": jnp.zeros((3 * hidden,), jnp.float32),
            "wo": n01((hidden, hidden)).astype(bf),
            "bo": jnp.zeros((hidden,), jnp.float32),
            "ln1_g": jnp.ones((hidden,), jnp.float32),
            "ln1_b": jnp.zeros((hidden,), jnp.float32),
            "w1": n01((hidden, intermediate)).astype(bf),
            "b1": jnp.zeros((intermediate,), jnp.float32),
            "w2": n01((intermediate, hidden)).astype(bf),
            "b2": jnp.zeros((hidden,), jnp.float32),
            "ln2_g": jnp.ones((hidden,), jnp.float32),
            "ln2_b": jnp.zeros((hidden,), jnp.float32),
        }
        p["layers"].append(lp)
    return p


def encoder_layer(x2, lp, *, B, S, heads):
    # x2: (B*S, H) bf16
    H = x2.shape[1]
    dh = H // heads

    qkv = pallas_linear(x2, lp["wqkv"], lp["bqkv"])                 # (B*S, 3H)
    ctx = pallas_attention(qkv, B, S, heads, dh).reshape(B * S, H)
    # TODO(synk): attention / hidden dropout omitted (eval-mode identity).
    # wo projection with residual-add + LayerNorm fused into its epilogue.
    h = pallas_linear_resln(ctx, lp["wo"], lp["bo"],
                            residual=x2, gamma=lp["ln1_g"], beta=lp["ln1_b"])

    ff = pallas_linear(h, lp["w1"], lp["b1"], activation="gelu")
    out = pallas_linear_resln(ff, lp["w2"], lp["b2"],
                              residual=h, gamma=lp["ln2_g"], beta=lp["ln2_b"])
    return out


def bert_finetune_forward(params, input_ids, *, heads):
    B, S = input_ids.shape
    H = params["word_emb"].shape[1]

    # Embedding lookups are gather glue (plain JAX).
    # TODO(synk): no attention_mask is applied -- the reference forward passes
    # only input_ids, so HF defaults to an all-ones mask (identical behavior).
    we = jnp.take(params["word_emb"], input_ids, axis=0)          # (B,S,H)
    pe = params["pos_emb"][:S][None, :, :]                        # (1,S,H)
    te = params["type_emb"][0][None, None, :]                     # token_type=0
    emb = (we + pe + te).reshape(B * S, H)
    h = pallas_layernorm(emb, params["emb_ln_g"], params["emb_ln_b"])

    for lp in params["layers"]:
        h = encoder_layer(h, lp, B=B, S=S, heads=heads)

    h = h.reshape(B, S, H)
    pooled = h[:, 0, :]                                           # CLS token
    # Dropout is identity in eval mode.
    logits_padded = pallas_linear(pooled, params["fc_w_pad"], params["fc_b_pad"],
                                  out_dtype=jnp.float32, tk=H)     # single K step
    return logits_padded[:, :params["num_classes"]]


if __name__ == "__main__":
    VOCAB, HIDDEN, HEADS, LAYERS = 100, 32, 2, 2
    INTERMEDIATE, MAX_POS, TYPE_VOCAB, NUM_CLASSES = 64, 16, 2, 4
    B, S = 2, 8

    key = jax.random.PRNGKey(0)
    pkey, dkey = jax.random.split(key)
    params = init_params(
        pkey, vocab=VOCAB, hidden=HIDDEN, heads=HEADS, layers=LAYERS,
        intermediate=INTERMEDIATE, max_pos=MAX_POS, type_vocab=TYPE_VOCAB,
        num_classes=NUM_CLASSES)

    input_ids = jax.random.randint(dkey, (B, S), 0, VOCAB, dtype=jnp.int32)

    logits = bert_finetune_forward(params, input_ids, heads=HEADS)
    jax.block_until_ready(logits)
    assert logits.shape == (B, NUM_CLASSES)
    assert bool(jnp.all(jnp.isfinite(logits)))
    print("KERNEL_OK")
</pallas_src>

<mosaic_0001>
module attributes {stable_mosaic.version = 11 : i64} {
  func.func @_layernorm_kernel(%arg0: i32, %arg1: memref<16x32xf32, #tpu.memory_space<vmem>>, %arg2: memref<1x32xf32, #tpu.memory_space<vmem>>, %arg3: memref<1x32xf32, #tpu.memory_space<vmem>>, %arg4: memref<16x32xbf16, #tpu.memory_space<vmem>>) attributes {dimension_semantics = [#tpu.dimension_semantics<parallel>], iteration_bounds = array<i64: 1>, scalar_prefetch = 0 : i64, scratch_operands = 0 : i64, tpu.core_type = #tpu.core_type<tc>, window_params = [{transform_indices = @transform_0, window_bounds = array<i64: 16, 32>}, {pipeline_mode = #tpu.pipeline_mode<synchronous>, transform_indices = @transform_1, window_bounds = array<i64: 1, 32>}, {pipeline_mode = #tpu.pipeline_mode<synchronous>, transform_indices = @transform_2, window_bounds = array<i64: 1, 32>}, {transform_indices = @transform_3, window_bounds = array<i64: 16, 32>}]} {
    %c0 = arith.constant 0 : index
    %c0_0 = arith.constant 0 : index
    %0 = vector.load %arg1[%c0, %c0_0] : memref<16x32xf32, #tpu.memory_space<vmem>>, vector<16x32xf32>
    %cst = arith.constant dense<0.000000e+00> : vector<16xf32>
    %1 = vector.multi_reduction <add>, %0, %cst [1] : vector<16x32xf32> to vector<16xf32>
    %2 = vector.shape_cast %1 : vector<16xf32> to vector<16x1xf32>
    %cst_1 = arith.constant 3.200000e+01 : f32
    %3 = vector.broadcast %cst_1 : f32 to vector<16x1xf32>
    %4 = arith.divf %2, %3 : vector<16x1xf32>
    %5 = vector.broadcast %4 : vector<16x1xf32> to vector<16x32xf32>
    %6 = arith.subf %0, %5 : vector<16x32xf32>
    %7 = arith.mulf %6, %6 : vector<16x32xf32>
    %cst_2 = arith.constant dense<0.000000e+00> : vector<16xf32>
    %8 = vector.multi_reduction <add>, %7, %cst_2 [1] : vector<16x32xf32> to vector<16xf32>
    %9 = vector.shape_cast %8 : vector<16xf32> to vector<16x1xf32>
    %cst_3 = arith.constant 3.200000e+01 : f32
    %10 = vector.broadcast %cst_3 : f32 to vector<16x1xf32>
    %11 = arith.divf %9, %10 : vector<16x1xf32>
    %cst_4 = arith.constant 9.99999996E-13 : f32
    %12 = vector.broadcast %cst_4 : f32 to vector<16x1xf32>
    %13 = arith.addf %11, %12 : vector<16x1xf32>
    %14 = math.rsqrt %13 : vector<16x1xf32>
    %15 = vector.broadcast %14 : vector<16x1xf32> to vector<16x32xf32>
    %16 = arith.mulf %6, %15 : vector<16x32xf32>
    %c0_5 = arith.constant 0 : index
    %c0_6 = arith.constant 0 : index
    %17 = vector.load %arg2[%c0_5, %c0_6] : memref<1x32xf32, #tpu.memory_space<vmem>>, vector<1x32xf32>
    %18 = vector.broadcast %17 : vector<1x32xf32> to vector<16x32xf32>
    %19 = arith.mulf %16, %18 : vector<16x32xf32>
    %c0_7 = arith.constant 0 : index
    %c0_8 = arith.constant 0 : index
    %20 = vector.load %arg3[%c0_7, %c0_8] : memref<1x32xf32, #tpu.memory_space<vmem>>, vector<1x32xf32>
    %21 = vector.broadcast %20 : vector<1x32xf32> to vector<16x32xf32>
    %22 = arith.addf %19, %21 : vector<16x32xf32>
    %23 = arith.truncf %22 : vector<16x32xf32> to vector<16x32xbf16>
    %c0_9 = arith.constant 0 : index
    %c0_10 = arith.constant 0 : index
    %24 = vector.load %arg4[%c0_9, %c0_10] : memref<16x32xbf16, #tpu.memory_space<vmem>>, vector<16x32xbf16>
    tpu.vector_store %arg4[%c0_9, %c0_10], %23 {strides = array<i32>} : memref<16x32xbf16, #tpu.memory_space<vmem>>, vector<16x32xbf16>,
    return
  }
  func.func @transform_0(%arg0: i32) -> (i32, i32) {
    %c0_i32 = arith.constant 0 : i32
    %c0_i32_0 = arith.constant 0 : i32
    return %arg0, %c0_i32 : i32, i32
  }
  func.func @transform_1(%arg0: i32) -> (i32, i32) {
    %c0_i32 = arith.constant 0 : i32
    %c0_i32_0 = arith.constant 0 : i32
    %c0_i32_1 = arith.constant 0 : i32
    return %c0_i32, %c0_i32_0 : i32, i32
  }
  func.func @transform_2(%arg0: i32) -> (i32, i32) {
    %c0_i32 = arith.constant 0 : i32
    %c0_i32_0 = arith.constant 0 : i32
    %c0_i32_1 = arith.constant 0 : i32
    return %c0_i32, %c0_i32_0 : i32, i32
  }
  func.func @transform_3(%arg0: i32) -> (i32, i32) {
    %c0_i32 = arith.constant 0 : i32
    %c0_i32_0 = arith.constant 0 : i32
    return %arg0, %c0_i32 : i32, i32
  }
}

</mosaic_0001>

<bundles_post_ra>
// kernel: tpu_custom_call.1
= control target key start
LH: loop header
LB: loop body
LE: loop exit
PB: predicated region body
PF: predicated region fallthrough
CT: control target
= control target key end

     0   :  { %8 = vsyncpa [#allocation3], 0  ;;  %s229_s0 = inlined_call_operand.hbm [shape: f32[16,32], index: 0, kind: input, shape index: {}]   ;;  %s230_s1 = inlined_call_operand.vmem [shape: f32[1,32], index: 1, kind: input, shape index: {}]   ;;  %s231_s2 = inlined_call_operand.vmem [shape: f32[1,32], index: 2, kind: input, shape index: {}]   ;;  %s232_s3 = inlined_call_operand.hbm [shape: bf16[16,32], index: 3, kind: output, shape index: {}]  }
   0x1   :  { %9 = vsyncpa [#allocation4], 0  ;;  %s169_s12 = smov [#allocation2]   ;;  %s121_s16 = scalar_lea.hbm %s229_s0, 256 }
   0x2   :  { %s15_s13 = sshll.u32 %s169_s12, 4  ;;  %p122_p0 = scmp.ne.s32.totalorder %s229_s0, %s121_s16  ;;  %s16_s13 = int_to_ptr.vmem [resolvable:$true] %s15_s13 }
   0x3   :  { %p125_p1 = scmp.lt.u32.totalorder %s121_s16, %s229_s0 }
   0x5   :  { %p127_p2 = pnand %p125_p1, %p122_p0 }
   0x7   :  { %130 = shalt.err (!%p127_p2)
}
   0x8   :  { %s131_s21 = scalar_lea.vmem %s16_s13, 256  ;;  %p136_p4 = scmp.lt.s32.totalorder %s16_s13, %s16_s13 }
   0x9   :  { %p132_p3 = scmp.ne.s32.totalorder %s16_s13, %s131_s21  ;;  %p137_p5 = scmp.lt.s32.totalorder %s131_s21, %s131_s21 }
   0xb   :  { %p138_p6 = por %p137_p5, %p136_p4 }
   0xd   :  { %p139_p7 = pnand %p138_p6, %p132_p3 }
   0xf   :  { %142 = shalt.err (!%p139_p7)
}
  0x10   :  { %s170_s22 = smov 128   ;;  %s171_s23 = smov 8  }
  0x11   :  { %21 = dma.hbm_to_vmem [thread:$0]  %s229_s0, 256, %s16_s13, [#allocation3], %s170_s22, %s170_s22, %s171_s23  }
  0x12   :  { %165 = dma.done.wait [#allocation3], 256  }
  0x13   :  { %166 = vsyncadd [#allocation3], 4294967040  ;;  %vm31_vm0 = vcmask 261120   ;;  %v29_v0 = vld [vmem:[#allocation2] sm:$0xff]  ;;  %v30_v1 = vld [vmem:[#allocation2 + $0x8] sm:$0xff]  ;;  %vm85_vm1 = vcmask 257024  }
  0x14   :  { %v32_v2 = vsel %vm31_vm0, %v29_v0, 0.0  ;;  %v35_v3 = vsel %vm31_vm0, %v30_v1, 0.0  ;;  %v105_v21 = vld [vmem:[%s230_s1] ss:$0 sm:$0xff]  ;;  %s172_s29 = smov [#allocation5]  }
  0x15   :  { %33 = vadd.xlane.f32.xlu0 %v32_v2  ;;  %v106_v23 = vld [vmem:[%s231_s2] ss:$0 sm:$0xff]  ;;  %s93_s30 = sshll.u32 %s172_s29, 4  ;;  %s94_s30 = int_to_ptr.vmem [resolvable:$true] %s93_s30 }
  0x16   :  { %s143_s1 = scalar_lea.vmem %s94_s30, 128  ;;  %p148_p9 = scmp.lt.s32.totalorder %s94_s30, %s94_s30 }
  0x17   :  { %p144_p8 = scmp.ne.s32.totalorder %s94_s30, %s143_s1  ;;  %p149_p10 = scmp.lt.s32.totalorder %s143_s1, %s143_s1 }
  0x19   :  { %36 = vadd.xlane.f32.xlu0 %v35_v3  ;;  %p150_p11 = por %p149_p10, %p148_p9 }
  0x1b   :  { %p151_p12 = pnand %p150_p11, %p144_p8 }
  0xa2   :  { %v34_v4 = vpop.xlane.xlu0 %33 }
  0xa3   :  { %v39_v5 = vmul.f32 0.03125, %v34_v4 }
  0xa5   :  { %v41_v6 = vsub.f32 %v29_v0, %v39_v5 }
  0xa6   :  { %v37_v7 = vpop.xlane.xlu0 %36 }
  0xa7   :  { %v40_v8 = vmul.f32 0.03125, %v37_v7  ;;  %v43_v9 = vmul.f32 %v41_v6, %v41_v6 }
  0xa9   :  { %v42_v10 = vsub.f32 %v30_v1, %v40_v8  ;;  %v45_v11 = vsel %vm31_vm0, %v43_v9, 0.0 }
  0xaa   :  { %46 = vadd.xlane.f32.xlu1 %v45_v11 }
  0xab   :  { %v44_v12 = vmul.f32 %v42_v10, %v42_v10 }
  0xad   :  { %v48_v13 = vsel %vm31_vm0, %v44_v12, 0.0 }
  0xae   :  { %49 = vadd.xlane.f32.xlu1 %v48_v13 }
 0x137   :  { %v47_v14 = vpop.xlane.xlu1 %46 }
 0x138   :  { %v51_v15 = vmul.f32 0.03125, %v47_v14 }
 0x13a   :  { %v53_v16 = vadd.f32 1e-12, %v51_v15 }
 0x13b   :  { %v50_v17 = vpop.xlane.xlu1 %49 }
 0x13c   :  { %117 = vrsqrt.f32 %v53_v16  ;;  %v52_v18 = vmul.f32 0.03125, %v50_v17 }
 0x13e   :  { %v54_v19 = vadd.f32 1e-12, %v52_v18 }
 0x140   :  { %119 = vrsqrt.f32 %v54_v19 }
 0x146   :  { %v118_v20 = vpop.eup %117 }
 0x147   :  { %v57_v22 = vmul.f32 %v118_v20, %v41_v6 }
 0x149   :  { %v66_v24 = vmul.f32 %v105_v21, %v57_v22 }
 0x14a   :  { %v120_v25 = vpop.eup %119 }
 0x14b   :  { %v58_v26 = vmul.f32 %v120_v25, %v42_v10  ;;  %v75_v27 = vadd.f32 %v106_v23, %v66_v24 }
 0x14d   :  { %v67_v28 = vmul.f32 %v105_v21, %v58_v26  ;;  %v109_v29 = vpack.c.bf16 %v75_v27, %v75_v27 }
 0x14f   :  { %v76_v30 = vadd.f32 %v106_v23, %v67_v28  ;;  %86 = vst.msk [vmem:[#allocation5] sm:$0xf] %vm85_vm1, %v109_v29 }
 0x151   :  { %v110_v31 = vpack.c.bf16 %v76_v30, %v76_v30 }
 0x153   :  { %87 = vst.msk [vmem:[#allocation5 + $0x4] sm:$0xf] %vm85_vm1, %v110_v31 }
 0x154   :  { %154 = shalt.err (!%p151_p12)
}
 0x155   :  { %s155_s5 = scalar_lea.hbm %s232_s3, 128 }
 0x156   :  { %p156_p13 = scmp.ne.s32.totalorder %s232_s3, %s155_s5  ;;  %p159_p0 = scmp.lt.u32.totalorder %s155_s5, %s232_s3 }
 0x158   :  { %p161_p1 = pnand %p159_p0, %p156_p13 }
 0x15a   :  { %164 = shalt.err (!%p161_p1)
}
 0x15b   :  { %s173_s10 = smov 64   ;;  %s174_s11 = smov 4  }
 0x15c   :  { %99 = dma.vmem_to_hbm [thread:$0]  %s94_s30, 128, %s232_s3, [#allocation4], %s173_s10, %s173_s10, %s174_s11  }
 0x15d   :  { %167 = dma.done.wait [#allocation4], 128  }
 0x15e   :  { %168 = vsyncadd [#allocation4], 4294967168 }
 0x15f   :  { %103 = vsyncpa [#allocation3], 1 }
 0x160   :  { %104 = vsyncpa [#allocation4], 1 }

</bundles_post_ra>
